<compile_context>
chip_gen: v6e
topology: v6e:2x2x1
jax: 0.10.0
libtpu: 0.0.40
codegen_flags: <defaults>
</compile_context>

<pallas_src>
import jax
import jax.numpy as jnp
from jax.experimental import pallas as pl
from jax.experimental.pallas import tpu as pltpu


def _round_up(x, m):
    return ((x + m - 1) // m) * m


def _pick_tile_m(m, tile_m):
    # >= 2 grid steps whenever M allows (v7x megacore), tile multiple of 8,
    # capped at tile_m (default 1024; measured roofline plateaus by 512-1024).
    half = _round_up(pl.cdiv(m, 2), 8)
    return max(8, min(tile_m, half))


def _linear_kernel(x_ref, wt_ref, b_ref, o_ref):
    # x_ref: (TM, K), wt_ref: (K, N), b_ref: (1, N) fp32, o_ref: (TM, N)
    x = x_ref[...]
    if x.dtype != wt_ref.dtype:
        x = x.astype(wt_ref.dtype)          # in-kernel cast -> bf16 MXU path
    acc = jnp.dot(x, wt_ref[...], preferred_element_type=jnp.float32)
    o_ref[...] = (acc + b_ref[...]).astype(o_ref.dtype)


class DimensionalityReducer:
    """Pallas-TPU port of torch.nn.Linear(input_dim, output_dim) forward.

    out = embeddings @ weight.T + bias
    weight: (N, K) torch layout; bias: (N,).
    """

    def __init__(self, weight, bias, *, compute_dtype=jnp.bfloat16,
                 tile_m=1024, out_dtype=None, min_rows_for_kernel=256):
        weight = jnp.asarray(weight)
        bias = jnp.asarray(bias)
        # Cache the transposed (and optionally bf16) weight ONCE at init;
        # nothing is rebuilt per forward call.
        wt = weight.T
        if compute_dtype is not None:
            wt = wt.astype(compute_dtype)
        self.wt = wt                                           # (K, N)
        self.b2d = bias.astype(jnp.float32).reshape(1, -1)     # (1, N) fp32
        self.tile_m = _round_up(int(tile_m), 8)
        self.out_dtype = out_dtype
        self.min_rows_for_kernel = int(min_rows_for_kernel)

    def __call__(self, embeddings, *, force_pallas=False):
        *lead, K = embeddings.shape
        N = self.wt.shape[1]
        assert K == self.wt.shape[0], (K, self.wt.shape)
        out_dtype = self.out_dtype if self.out_dtype is not None else embeddings.dtype

        x2d = embeddings.reshape(-1, K)
        M = x2d.shape[0]

        # ---- small-M fast path: kernel fixed overhead dominates there ----
        if (M < self.min_rows_for_kernel) and not force_pallas:
            xc = x2d if x2d.dtype == self.wt.dtype else x2d.astype(self.wt.dtype)
            out2d = jnp.dot(xc, self.wt, preferred_element_type=jnp.float32) + self.b2d
            return out2d.astype(out_dtype).reshape(*lead, N)

        # ---- Pallas path ----
        tm = _pick_tile_m(M, self.tile_m)
        grid = (pl.cdiv(M, tm),)            # ragged tail -> partial final block

        cost = pl.CostEstimate(
            flops=2 * M * K * N,
            transcendentals=0,
            bytes_accessed=(M * K * x2d.dtype.itemsize
                            + K * N * self.wt.dtype.itemsize
                            + N * 4
                            + M * N * jnp.dtype(out_dtype).itemsize),
        )

        out2d = pl.pallas_call(
            _linear_kernel,
            out_shape=jax.ShapeDtypeStruct((M, N), out_dtype),
            grid=grid,
            in_specs=[
                pl.BlockSpec((tm, K), lambda i: (i, 0)),   # streamed activations
                pl.BlockSpec((K, N), lambda i: (0, 0)),    # VMEM-resident weight
                pl.BlockSpec((1, N), lambda i: (0, 0)),    # VMEM-resident bias
            ],
            out_specs=pl.BlockSpec((tm, N), lambda i: (i, 0)),
            compiler_params=pltpu.CompilerParams(
                dimension_semantics=("parallel",),         # megacore on v7x
            ),
            cost_estimate=cost,
        )(x2d, self.wt, self.b2d)

        return out2d.reshape(*lead, N)


if __name__ == "__main__":
    INPUT_DIM, OUTPUT_DIM = 768, 300
    BATCH, SEQ = 2, 8

    key = jax.random.PRNGKey(0)
    k_x, k_w, k_b, k_x2 = jax.random.split(key, 4)

    # Deterministic synthetic parameters (same shapes as nn.Linear(768, 300)).
    bound = 1.0 / (INPUT_DIM ** 0.5)
    weight = jax.random.uniform(k_w, (OUTPUT_DIM, INPUT_DIM),
                                minval=-bound, maxval=bound, dtype=jnp.float32)
    bias = jax.random.uniform(k_b, (OUTPUT_DIM,),
                              minval=-bound, maxval=bound, dtype=jnp.float32)
    embeddings = jax.random.normal(k_x, (BATCH, SEQ, INPUT_DIM), dtype=jnp.float32)

    ref = embeddings @ weight.T + bias

    # 1) fp32 path, Pallas kernel forced: matches nn.Linear numerics tightly.
    red_fp32 = DimensionalityReducer(weight, bias, compute_dtype=None)
    out_fp32 = jax.block_until_ready(red_fp32(embeddings, force_pallas=True))
    assert out_fp32.shape == (BATCH, SEQ, OUTPUT_DIM), out_fp32.shape
    assert jnp.allclose(out_fp32, ref, atol=1e-4, rtol=1e-4), \
        float(jnp.max(jnp.abs(out_fp32 - ref)))

    # 2) default bf16-operand path (fp32 accumulation), Pallas kernel forced.
    red_bf16 = DimensionalityReducer(weight, bias)
    out_bf16 = jax.block_until_ready(red_bf16(embeddings, force_pallas=True))
    assert jnp.allclose(out_bf16, ref, atol=5e-2, rtol=5e-2), \
        float(jnp.max(jnp.abs(out_bf16 - ref)))

    # 3) ragged row count: M=300 -> 2 grid steps with a partial final block.
    emb_big = jax.random.normal(k_x2, (3, 100, INPUT_DIM), dtype=jnp.float32)
    ref_big = emb_big @ weight.T + bias
    out_big = jax.block_until_ready(red_fp32(emb_big, force_pallas=True))
    assert out_big.shape == (3, 100, OUTPUT_DIM), out_big.shape
    assert jnp.allclose(out_big, ref_big, atol=1e-4, rtol=1e-4), \
        float(jnp.max(jnp.abs(out_big - ref_big)))

    # 4) small-M auto fast path (M=16 skips the Pallas call).
    out_auto = jax.block_until_ready(red_bf16(embeddings))
    assert jnp.allclose(out_auto, ref, atol=5e-2, rtol=5e-2)

    print("KERNEL_OK")
</pallas_src>

<mosaic_0001>
module attributes {stable_mosaic.version = 11 : i64} {
  func.func @_linear_kernel(%arg0: i32, %arg1: memref<8x768xf32, #tpu.memory_space<vmem>>, %arg2: memref<768x300xf32, #tpu.memory_space<vmem>>, %arg3: memref<1x300xf32, #tpu.memory_space<vmem>>, %arg4: memref<8x300xf32, #tpu.memory_space<vmem>>) attributes {dimension_semantics = [#tpu.dimension_semantics<parallel>], iteration_bounds = array<i64: 2>, scalar_prefetch = 0 : i64, scratch_operands = 0 : i64, tpu.core_type = #tpu.core_type<tc>, window_params = [{transform_indices = @transform_0, window_bounds = array<i64: 8, 768>}, {pipeline_mode = #tpu.pipeline_mode<synchronous>, transform_indices = @transform_1, window_bounds = array<i64: 768, 300>}, {pipeline_mode = #tpu.pipeline_mode<synchronous>, transform_indices = @transform_2, window_bounds = array<i64: 1, 300>}, {transform_indices = @transform_3, window_bounds = array<i64: 8, 300>}]} {
    %c0 = arith.constant 0 : index
    %c0_0 = arith.constant 0 : index
    %0 = vector.load %arg1[%c0, %c0_0] : memref<8x768xf32, #tpu.memory_space<vmem>>, vector<8x768xf32>
    %c0_1 = arith.constant 0 : index
    %c0_2 = arith.constant 0 : index
    %1 = vector.load %arg2[%c0_1, %c0_2] : memref<768x300xf32, #tpu.memory_space<vmem>>, vector<768x300xf32>
    %cst = arith.constant dense<0.000000e+00> : vector<8x300xf32>
    %2 = tpu.matmul %0, %1, %cst {dimension_numbers = #tpu.dot_dimension_numbers<[1], [0], [0], [1], [0, 0, 1, 1], [], []>} : vector<8x768xf32>, vector<768x300xf32>, vector<8x300xf32> -> vector<8x300xf32>
    %c0_3 = arith.constant 0 : index
    %c0_4 = arith.constant 0 : index
    %3 = vector.load %arg3[%c0_3, %c0_4] : memref<1x300xf32, #tpu.memory_space<vmem>>, vector<1x300xf32>
    %4 = vector.broadcast %3 : vector<1x300xf32> to vector<8x300xf32>
    %5 = arith.addf %2, %4 : vector<8x300xf32>
    %c0_5 = arith.constant 0 : index
    %c0_6 = arith.constant 0 : index
    %6 = vector.load %arg4[%c0_5, %c0_6] : memref<8x300xf32, #tpu.memory_space<vmem>>, vector<8x300xf32>
    tpu.vector_store %arg4[%c0_5, %c0_6], %5 {strides = array<i32>} : memref<8x300xf32, #tpu.memory_space<vmem>>, vector<8x300xf32>,
    return
  }
  func.func @transform_0(%arg0: i32) -> (i32, i32) {
    %c0_i32 = arith.constant 0 : i32
    %c0_i32_0 = arith.constant 0 : i32
    return %arg0, %c0_i32 : i32, i32
  }
  func.func @transform_1(%arg0: i32) -> (i32, i32) {
    %c0_i32 = arith.constant 0 : i32
    %c0_i32_0 = arith.constant 0 : i32
    %c0_i32_1 = arith.constant 0 : i32
    return %c0_i32, %c0_i32_0 : i32, i32
  }
  func.func @transform_2(%arg0: i32) -> (i32, i32) {
    %c0_i32 = arith.constant 0 : i32
    %c0_i32_0 = arith.constant 0 : i32
    %c0_i32_1 = arith.constant 0 : i32
    return %c0_i32, %c0_i32_0 : i32, i32
  }
  func.func @transform_3(%arg0: i32) -> (i32, i32) {
    %c0_i32 = arith.constant 0 : i32
    %c0_i32_0 = arith.constant 0 : i32
    return %arg0, %c0_i32 : i32, i32
  }
}

</mosaic_0001>

<bundles_post_ra>
// kernel: tpu_custom_call.1
= control target key start
LH: loop header
LB: loop body
LE: loop exit
PB: predicated region body
PF: predicated region fallthrough
CT: control target
= control target key end

     0   :  { %8 = vsyncpa [#allocation3], 0  ;;  %s2210_s0 = inlined_call_operand.vmem [shape: f32[16,768], index: 0, kind: input, shape index: {}]   ;;  %s2211_s1 = inlined_call_operand.vmem [shape: f32[768,300], index: 1, kind: input, shape index: {}]   ;;  %s2212_s2 = inlined_call_operand.vmem [shape: f32[1,300], index: 2, kind: input, shape index: {}]   ;;  %s2213_s3 = inlined_call_operand.hbm [shape: f32[16,300], index: 3, kind: output, shape index: {}]  }
   0x1   :  { %10 = vsyncpa [#allocation3 + $0x1], 0  ;;  %s1219_s12 = smov 0   ;;  %s1221_s13 = smov 0  }
   0x2   :  { %s1223_s14 = smov 0   ;;  %s1225_s15 = smov 0  }
   0x3 LB: > { %s1240_s16 = sadd.s32 4294967295, %s1196_s15   ;;  %s981_s17 = sadd.s32 4294967294, %s1196_s15   ;;  %s1196_s15 = sphi %s1225_s15, %s2219_s15   ;;  %s1192_s14 = sphi %s1223_s14, %s2218_s14   ;;  %s1188_s13 = sphi %s1221_s13, %s2217_s13   ;;  %s1184_s12 = sphi %s1219_s12, %s2216_s12  }
   0x4   : > { %s1244_s18 = sadd.s32 1, %s1196_s15   ;;  %s91_s19 = sadd.s32 1, %s1192_s14 }
   0x5   : > { %s88_s20 = ssub.s32 %s1196_s15, %s1244_s18  ;;  %p101_p0 = scmp.ne.s32.totalorder %s1192_s14, %s1188_s13 }
   0x6   : > { %p89_p1 = scmp.eq.s32.totalorder %s88_s20, 0  ;;  %p102_p2 = scmp.eq.s32.totalorder %s1240_s16, 1 }
   0x7   : > { %p107_p3 = scmp.ne.s32.totalorder %s1188_s13, %s1184_s12  ;;  %p108_p4 = scmp.eq.s32.totalorder %s981_s17, 1 }
   0x8   : > { %s1255_s21 = scalar_select %p89_p1, %s1192_s14, %s91_s19  }
   0x9   : > { %p1257_p5 = por %p102_p2, %p101_p0  ;;  %p1261_p6 = por %p108_p4, %p107_p3 }
   0xa   : > { %p984_p7 = scmp.ge.s32.totalorder %s1196_s15, 1  ;;  %p140_p8 = scmp.lt.s32.totalorder %s1196_s15, 3 }
   0xc   : > { %p141_p9 = pnand %p984_p7, %p140_p8 }
   0xd   : > { %p164_p10 = scmp.lt.s32.totalorder (!%p141_p9), %s1240_s16, 1  ;;  %s1096_s4 = smul.u32 (!%p141_p9), 384, %s1240_s16 }
   0xe   : > { %144 = sbr.rel (%p141_p9) target bundleno = 397 (0x18d), region = 32 }
   0xf   : > { %s920_s8 = scalar_lea.hbm (!%p141_p9), %s2213_s3, %s1096_s4 }
  0x13   : > { %v221_v0 = vld [vmem:[%s2211_s1 + $0x170] sm:$0xff]  ;;  %v220_v2 = vld [vmem:[%s2211_s1 + $0x168] sm:$0xff]  ;;  %v218_v4 = vld [vmem:[%s2211_s1 + $0x158] sm:$0xff]  ;;  %s1589_s11 = scalar_select %p164_p10, %s1240_s16, 1  ;;  %vm905_vm0 = vcmask 359424  }
  0x14   : > { %v317_v1 = vld [vmem:[%s2211_s1 + $0x470] sm:$0xff]  ;;  %480 = vmatprep.subr.mxu0 %v221_v0  ;;  %v316_v3 = vld [vmem:[%s2211_s1 + $0x468] sm:$0xff]  ;;  %v314_v5 = vld [vmem:[%s2211_s1 + $0x458] sm:$0xff]  ;;  %s1198_s16 = smov [#allocation2]  }
  0x15   : > { %551 = vmatprep.subr.mxu1 %v317_v1  ;;  %481 = vmatpush1.msra.mxu0 %v220_v2  ;;  %v217_v6 = vld [vmem:[%s2211_s1 + $0x150] sm:$0xff]  ;;  %v215_v8 = vld [vmem:[%s2211_s1 + $0x140] sm:$0xff]  ;;  %v214_v10 = vld [vmem:[%s2211_s1 + $0x138] sm:$0xff]  ;;  %s1095_s10 = smul.u32 48, %s1589_s11  ;;  %s161_s11 = sand.u32 1, %s1188_s13  }
  0x16   : > { %552 = vmatpush1.msra.mxu1 %v316_v3  ;;  %v313_v7 = vld [vmem:[%s2211_s1 + $0x450] sm:$0xff]  ;;  %482 = vmatprep.subr.mxu0 %v218_v4  ;;  %v311_v9 = vld [vmem:[%s2211_s1 + $0x440] sm:$0xff]  ;;  %v310_v11 = vld [vmem:[%s2211_s1 + $0x438] sm:$0xff]  ;;  %s1094_s29 = smul.u32 24, %s161_s11  ;;  %s908_s9 = scalar_lea.sflag [#allocation3], %s161_s11 }
  0x17   : > { %553 = vmatprep.subr.mxu1 %v314_v5  ;;  %483 = vmatpush1.msra.mxu0 %v217_v6  ;;  %v212_v12 = vld [vmem:[%s2211_s1 + $0x128] sm:$0xff]  ;;  %v211_v14 = vld [vmem:[%s2211_s1 + $0x120] sm:$0xff]  ;;  %v209_v16 = vld [vmem:[%s2211_s1 + $0x110] sm:$0xff]  ;;  %s1643_s19 = scalar_lea.vmem %s2210_s0, %s1095_s10  ;;  %s1140_s20 = sshll.u32 %s1198_s16, 4  ;;  %s1141_s20 = int_to_ptr.vmem [resolvable:$false] %s1140_s20 }
  0x18   : > { %554 = vmatpush1.msra.mxu1 %v313_v7  ;;  %v308_v13 = vld [vmem:[%s2211_s1 + $0x428] sm:$0xff]  ;;  %484 = vmatprep.subr.mxu0 %v215_v8  ;;  %v307_v15 = vld [vmem:[%s2211_s1 + $0x420] sm:$0xff]  ;;  %v305_v17 = vld [vmem:[%s2211_s1 + $0x410] sm:$0xff]  ;;  %s163_s30 = scalar_lea.vmem [#allocation2], %s1094_s29 }
  0x19   : > { %555 = vmatprep.subr.mxu1 %v311_v9  ;;  %485 = vmatpush1.msra.mxu0 %v214_v10  ;;  %v208_v18 = vld [vmem:[%s2211_s1 + $0x108] sm:$0xff]  ;;  %v206_v20 = vld [vmem:[%s2211_s1 + $0xf8] sm:$0xff]  ;;  %v205_v22 = vld [vmem:[%s2211_s1 + $0xf0] sm:$0xff]  ;;  %s922_s5 = sshll.u32 %s163_s30, 4  ;;  %s923_s5 = int_to_ptr.vmem [resolvable:$true] %s922_s5 }
  0x1a   : > { %556 = vmatpush1.msra.mxu1 %v310_v11  ;;  %486 = vmatprep.subr.mxu0 %v212_v12  ;;  %v304_v19 = vld [vmem:[%s2211_s1 + $0x408] sm:$0xff]  ;;  %v302_v21 = vld [vmem:[%s2211_s1 + $0x3f8] sm:$0xff]  ;;  %v301_v23 = vld [vmem:[%s2211_s1 + $0x3f0] sm:$0xff]  ;;  %s1136_s17 = scalar_lea.vmem %s923_s5, 384  ;;  %p1143_p0 = scmp.lt.s32.totalorder %s923_s5, %s1141_s20 }
  0x1b   : > { %557 = vmatprep.subr.mxu1 %v308_v13  ;;  %487 = vmatpush1.msra.mxu0 %v211_v14  ;;  %v203_v24 = vld [vmem:[%s2211_s1 + $0xe0] sm:$0xff]  ;;  %v202_v26 = vld [vmem:[%s2211_s1 + $0xd8] sm:$0xff]  ;;  %v200_v28 = vld [vmem:[%s2211_s1 + $0xc8] sm:$0xff]  ;;  %p1137_p11 = scmp.ne.s32.totalorder %s923_s5, %s1136_s17 }
  0x1c   : > { %558 = vmatpush1.msra.mxu1 %v307_v15  ;;  %488 = vmatprep.subr.mxu0 %v209_v16  ;;  %v299_v25 = vld [vmem:[%s2211_s1 + $0x3e0] sm:$0xff]  ;;  %v298_v27 = vld [vmem:[%s2211_s1 + $0x3d8] sm:$0xff]  ;;  %v296_v29 = vld [vmem:[%s2211_s1 + $0x3c8] sm:$0xff] }
  0x1d   : > { %559 = vmatprep.subr.mxu1 %v305_v17  ;;  %489 = vmatpush1.msra.mxu0 %v208_v18  ;;  %v199_v30 = vld [vmem:[%s2211_s1 + $0xc0] sm:$0xff]  ;;  %v197_v32 = vld [vmem:[%s2211_s1 + $0xb0] sm:$0xff]  ;;  %v196_v34 = vld [vmem:[%s2211_s1 + $0xa8] sm:$0xff]  ;;  %p1138_p12 = pnand %p1137_p11, %p1257_p5 }
  0x1e   : > { %560 = vmatpush1.msra.mxu1 %v304_v19  ;;  %490 = vmatprep.subr.mxu0 %v206_v20  ;;  %v295_v31 = vld [vmem:[%s2211_s1 + $0x3c0] sm:$0xff]  ;;  %v293_v33 = vld [vmem:[%s2211_s1 + $0x3b0] sm:$0xff]  ;;  %v292_v35 = vld [vmem:[%s2211_s1 + $0x3a8] sm:$0xff] }
  0x1f   : > { %561 = vmatprep.subr.mxu1 %v302_v21  ;;  %491 = vmatpush1.msra.mxu0 %v205_v22  ;;  %v194_v36 = vld [vmem:[%s2211_s1 + $0x98] sm:$0xff]  ;;  %v193_v38 = vld [vmem:[%s2211_s1 + $0x90] sm:$0xff]  ;;  %v191_v40 = vld [vmem:[%s2211_s1 + $0x80] sm:$0xff]  ;;  %p1139_p13 = pneg %p1138_p12 }
  0x20   : > { %562 = vmatpush1.msra.mxu1 %v301_v23  ;;  %492 = vmatprep.subr.mxu0 %v203_v24  ;;  %v290_v37 = vld [vmem:[%s2211_s1 + $0x398] sm:$0xff]  ;;  %v289_v39 = vld [vmem:[%s2211_s1 + $0x390] sm:$0xff]  ;;  %v287_v41 = vld [vmem:[%s2211_s1 + $0x380] sm:$0xff] }
  0x21   : > { %563 = vmatprep.subr.mxu1 %v299_v25  ;;  %493 = vmatpush1.msra.mxu0 %v202_v26  ;;  %v190_v42 = vld [vmem:[%s2211_s1 + $0x78] sm:$0xff]  ;;  %v188_v44 = vld [vmem:[%s2211_s1 + $0x68] sm:$0xff]  ;;  %v187_v46 = vld [vmem:[%s2211_s1 + $0x60] sm:$0xff] }
  0x22   : > { %564 = vmatpush1.msra.mxu1 %v298_v27  ;;  %494 = vmatprep.subr.mxu0 %v200_v28  ;;  %v286_v43 = vld [vmem:[%s2211_s1 + $0x378] sm:$0xff]  ;;  %v284_v45 = vld [vmem:[%s2211_s1 + $0x368] sm:$0xff]  ;;  %v283_v47 = vld [vmem:[%s2211_s1 + $0x360] sm:$0xff] }
  0x23   : > { %565 = vmatprep.subr.mxu1 %v296_v29  ;;  %495 = vmatpush1.msra.mxu0 %v199_v30  ;;  %v185_v48 = vld [vmem:[%s2211_s1 + $0x50] sm:$0xff]  ;;  %v184_v50 = vld [vmem:[%s2211_s1 + $0x48] sm:$0xff]  ;;  %v182_v52 = vld [vmem:[%s2211_s1 + $0x38] sm:$0xff] }
  0x24   : > { %566 = vmatpush1.msra.mxu1 %v295_v31  ;;  %496 = vmatprep.subr.mxu0 %v197_v32  ;;  %v281_v49 = vld [vmem:[%s2211_s1 + $0x350] sm:$0xff]  ;;  %v280_v51 = vld [vmem:[%s2211_s1 + $0x348] sm:$0xff]  ;;  %v278_v53 = vld [vmem:[%s2211_s1 + $0x338] sm:$0xff] }
  0x25   : > { %567 = vmatprep.subr.mxu1 %v293_v33  ;;  %497 = vmatpush1.msra.mxu0 %v196_v34  ;;  %v181_v54 = vld [vmem:[%s2211_s1 + $0x30] sm:$0xff]  ;;  %v179_v56 = vld [vmem:[%s2211_s1 + $0x20] sm:$0xff]  ;;  %v178_v58 = vld [vmem:[%s2211_s1 + $0x18] sm:$0xff] }
  0x26   : > { %568 = vmatpush1.msra.mxu1 %v292_v35  ;;  %498 = vmatprep.subr.mxu0 %v194_v36  ;;  %v277_v55 = vld [vmem:[%s2211_s1 + $0x330] sm:$0xff]  ;;  %v275_v57 = vld [vmem:[%s2211_s1 + $0x320] sm:$0xff]  ;;  %v274_v59 = vld [vmem:[%s2211_s1 + $0x318] sm:$0xff] }
  0x27   : > { %569 = vmatprep.subr.mxu1 %v290_v37  ;;  %499 = vmatpush1.msra.mxu0 %v193_v38  ;;  %v176_v60 = vld [vmem:[%s2211_s1 + $0x8] sm:$0xff]  ;;  %v175_v62 = vld [vmem:[%s2211_s1] sm:$0xff]  ;;  %v269_v0 = vld [vmem:[%s2211_s1 + $0x2f0] sm:$0xff] }
  0x28   : > { %570 = vmatpush1.msra.mxu1 %v289_v39  ;;  %500 = vmatprep.subr.mxu0 %v191_v40  ;;  %v272_v61 = vld [vmem:[%s2211_s1 + $0x308] sm:$0xff]  ;;  %v271_v63 = vld [vmem:[%s2211_s1 + $0x300] sm:$0xff]  ;;  %v365_v1 = vld [vmem:[%s2211_s1 + $0x5f0] sm:$0xff] }
  0x29   : > { %571 = vmatprep.subr.mxu1 %v287_v41  ;;  %501 = vmatpush1.msra.mxu0 %v190_v42  ;;  %v268_v2 = vld [vmem:[%s2211_s1 + $0x2e8] sm:$0xff]  ;;  %v266_v4 = vld [vmem:[%s2211_s1 + $0x2d8] sm:$0xff]  ;;  %v265_v6 = vld [vmem:[%s2211_s1 + $0x2d0] sm:$0xff] }
  0x2a   : > { %572 = vmatpush1.msra.mxu1 %v286_v43  ;;  %502 = vmatprep.subr.mxu0 %v188_v44  ;;  %v364_v3 = vld [vmem:[%s2211_s1 + $0x5e8] sm:$0xff]  ;;  %v362_v5 = vld [vmem:[%s2211_s1 + $0x5d8] sm:$0xff]  ;;  %v361_v7 = vld [vmem:[%s2211_s1 + $0x5d0] sm:$0xff] }
  0x2b   : > { %573 = vmatprep.subr.mxu1 %v284_v45  ;;  %503 = vmatpush1.msra.mxu0 %v187_v46  ;;  %v263_v8 = vld [vmem:[%s2211_s1 + $0x2c0] sm:$0xff]  ;;  %v262_v10 = vld [vmem:[%s2211_s1 + $0x2b8] sm:$0xff]  ;;  %v260_v12 = vld [vmem:[%s2211_s1 + $0x2a8] sm:$0xff] }
  0x2c   : > { %574 = vmatpush1.msra.mxu1 %v283_v47  ;;  %504 = vmatprep.subr.mxu0 %v185_v48  ;;  %v359_v9 = vld [vmem:[%s2211_s1 + $0x5c0] sm:$0xff]  ;;  %v358_v11 = vld [vmem:[%s2211_s1 + $0x5b8] sm:$0xff]  ;;  %v356_v13 = vld [vmem:[%s2211_s1 + $0x5a8] sm:$0xff] }
  0x2d   : > { %575 = vmatprep.subr.mxu1 %v281_v49  ;;  %505 = vmatpush1.msra.mxu0 %v184_v50  ;;  %v259_v14 = vld [vmem:[%s2211_s1 + $0x2a0] sm:$0xff]  ;;  %v257_v16 = vld [vmem:[%s2211_s1 + $0x290] sm:$0xff]  ;;  %v256_v18 = vld [vmem:[%s2211_s1 + $0x288] sm:$0xff] }
  0x2e   : > { %576 = vmatpush1.msra.mxu1 %v280_v51  ;;  %506 = vmatprep.subr.mxu0 %v182_v52  ;;  %v355_v15 = vld [vmem:[%s2211_s1 + $0x5a0] sm:$0xff]  ;;  %v353_v17 = vld [vmem:[%s2211_s1 + $0x590] sm:$0xff]  ;;  %v352_v19 = vld [vmem:[%s2211_s1 + $0x588] sm:$0xff] }
  0x2f   : > { %577 = vmatprep.subr.mxu1 %v278_v53  ;;  %507 = vmatpush1.msra.mxu0 %v181_v54  ;;  %v254_v20 = vld [vmem:[%s2211_s1 + $0x278] sm:$0xff]  ;;  %v253_v22 = vld [vmem:[%s2211_s1 + $0x270] sm:$0xff]  ;;  %v251_v24 = vld [vmem:[%s2211_s1 + $0x260] sm:$0xff] }
  0x30   : > { %578 = vmatpush1.msra.mxu1 %v277_v55  ;;  %508 = vmatprep.subr.mxu0 %v179_v56  ;;  %v350_v21 = vld [vmem:[%s2211_s1 + $0x578] sm:$0xff]  ;;  %v349_v23 = vld [vmem:[%s2211_s1 + $0x570] sm:$0xff]  ;;  %v347_v25 = vld [vmem:[%s2211_s1 + $0x560] sm:$0xff] }
  0x31   : > { %579 = vmatprep.subr.mxu1 %v275_v57  ;;  %509 = vmatpush1.msra.mxu0 %v178_v58  ;;  %v250_v26 = vld [vmem:[%s2211_s1 + $0x258] sm:$0xff]  ;;  %v248_v28 = vld [vmem:[%s2211_s1 + $0x248] sm:$0xff]  ;;  %v247_v30 = vld [vmem:[%s2211_s1 + $0x240] sm:$0xff] }
  0x32   : > { %580 = vmatpush1.msra.mxu1 %v274_v59  ;;  %510 = vmatprep.subr.mxu0 %v176_v60  ;;  %v346_v27 = vld [vmem:[%s2211_s1 + $0x558] sm:$0xff]  ;;  %v344_v29 = vld [vmem:[%s2211_s1 + $0x548] sm:$0xff]  ;;  %v343_v31 = vld [vmem:[%s2211_s1 + $0x540] sm:$0xff] }
  0x33   : > { %581 = vmatprep.subr.mxu1 %v272_v61  ;;  %511 = vmatpush1.msra.mxu0 %v175_v62  ;;  %v245_v32 = vld [vmem:[%s2211_s1 + $0x230] sm:$0xff]  ;;  %v244_v34 = vld [vmem:[%s2211_s1 + $0x228] sm:$0xff]  ;;  %v242_v36 = vld [vmem:[%s2211_s1 + $0x218] sm:$0xff] }
  0x34   : > { %582 = vmatpush1.msra.mxu1 %v271_v63  ;;  %512 = vmatprep.subr.mxu0 %v269_v0  ;;  %v341_v33 = vld [vmem:[%s2211_s1 + $0x530] sm:$0xff]  ;;  %v340_v35 = vld [vmem:[%s2211_s1 + $0x528] sm:$0xff]  ;;  %v338_v37 = vld [vmem:[%s2211_s1 + $0x518] sm:$0xff] }
  0x35   : > { %583 = vmatprep.subr.mxu1 %v365_v1  ;;  %513 = vmatpush2.msra.mxu0 %v268_v2  ;;  %v241_v38 = vld [vmem:[%s2211_s1 + $0x210] sm:$0xff]  ;;  %v239_v40 = vld [vmem:[%s2211_s1 + $0x200] sm:$0xff]  ;;  %v238_v42 = vld [vmem:[%s2211_s1 + $0x1f8] sm:$0xff] }
  0x36   : > { %584 = vmatpush2.msra.mxu1 %v364_v3  ;;  %514 = vmatprep.subr.mxu0 %v266_v4  ;;  %v337_v39 = vld [vmem:[%s2211_s1 + $0x510] sm:$0xff]  ;;  %v335_v41 = vld [vmem:[%s2211_s1 + $0x500] sm:$0xff]  ;;  %v334_v43 = vld [vmem:[%s2211_s1 + $0x4f8] sm:$0xff] }
  0x37   : > { %585 = vmatprep.subr.mxu1 %v362_v5  ;;  %515 = vmatpush2.msra.mxu0 %v265_v6  ;;  %v236_v44 = vld [vmem:[%s2211_s1 + $0x1e8] sm:$0xff]  ;;  %v235_v46 = vld [vmem:[%s2211_s1 + $0x1e0] sm:$0xff]  ;;  %v233_v48 = vld [vmem:[%s2211_s1 + $0x1d0] sm:$0xff] }
  0x38   : > { %586 = vmatpush2.msra.mxu1 %v361_v7  ;;  %516 = vmatprep.subr.mxu0 %v263_v8  ;;  %v332_v45 = vld [vmem:[%s2211_s1 + $0x4e8] sm:$0xff]  ;;  %v331_v47 = vld [vmem:[%s2211_s1 + $0x4e0] sm:$0xff]  ;;  %v329_v49 = vld [vmem:[%s2211_s1 + $0x4d0] sm:$0xff] }
  0x39   : > { %587 = vmatprep.subr.mxu1 %v359_v9  ;;  %517 = vmatpush2.msra.mxu0 %v262_v10  ;;  %v232_v50 = vld [vmem:[%s2211_s1 + $0x1c8] sm:$0xff]  ;;  %v230_v52 = vld [vmem:[%s2211_s1 + $0x1b8] sm:$0xff]  ;;  %v229_v54 = vld [vmem:[%s2211_s1 + $0x1b0] sm:$0xff] }
  0x3a   : > { %588 = vmatpush2.msra.mxu1 %v358_v11  ;;  %518 = vmatprep.subr.mxu0 %v260_v12  ;;  %v328_v51 = vld [vmem:[%s2211_s1 + $0x4c8] sm:$0xff]  ;;  %v326_v53 = vld [vmem:[%s2211_s1 + $0x4b8] sm:$0xff]  ;;  %v325_v55 = vld [vmem:[%s2211_s1 + $0x4b0] sm:$0xff] }
  0x3b   : > { %589 = vmatprep.subr.mxu1 %v356_v13  ;;  %519 = vmatpush2.msra.mxu0 %v259_v14  ;;  %v227_v56 = vld [vmem:[%s2211_s1 + $0x1a0] sm:$0xff]  ;;  %v226_v58 = vld [vmem:[%s2211_s1 + $0x198] sm:$0xff]  ;;  %v224_v60 = vld [vmem:[%s2211_s1 + $0x188] sm:$0xff] }
  0x3c   : > { %590 = vmatpush2.msra.mxu1 %v355_v15  ;;  %520 = vmatprep.subr.mxu0 %v257_v16  ;;  %v323_v57 = vld [vmem:[%s2211_s1 + $0x4a0] sm:$0xff]  ;;  %v322_v59 = vld [vmem:[%s2211_s1 + $0x498] sm:$0xff]  ;;  %v320_v61 = vld [vmem:[%s2211_s1 + $0x488] sm:$0xff] }
  0x3d   : > { %591 = vmatprep.subr.mxu1 %v353_v17  ;;  %521 = vmatpush2.msra.mxu0 %v256_v18  ;;  %v223_v62 = vld [vmem:[%s2211_s1 + $0x180] sm:$0xff]  ;;  %v1661_v63 = vld [vmem:[%s1643_s19 + $0x8] sm:$0xff]  ;;  %v1670_v2 = vld [vmem:[%s1643_s19 + $0x18] sm:$0xff] }
  0x3e   : > { %592 = vmatpush2.msra.mxu1 %v352_v19  ;;  %522 = vmatprep.subr.mxu0 %v254_v20  ;;  %v319_v0 = vld [vmem:[%s2211_s1 + $0x480] sm:$0xff]  ;;  %v413_v3 = vld [vmem:[%s2211_s1 + $0x770] sm:$0xff]  ;;  %v270_v4 = vld [vmem:[%s2211_s1 + $0x2f8] sm:$0xff] }
  0x3f   : > { %593 = vmatprep.subr.mxu1 %v350_v21  ;;  %523 = vmatpush2.msra.mxu0 %v253_v22  ;;  %v1667_v1 = vld [vmem:[%s1643_s19] sm:$0xff]  ;;  %v1680_v5 = vld [vmem:[%s1643_s19 + $0x10] sm:$0xff]  ;;  %v412_v6 = vld [vmem:[%s2211_s1 + $0x768] sm:$0xff] }
  0x40   : > { %594 = vmatpush2.msra.mxu1 %v349_v23  ;;  %524 = vmatprep.subr.mxu0 %v251_v24  ;;  %v222_v7 = vld [vmem:[%s2211_s1 + $0x178] sm:$0xff]  ;;  %v267_v9 = vld [vmem:[%s2211_s1 + $0x2e0] sm:$0xff]  ;;  %v409_v10 = vld [vmem:[%s2211_s1 + $0x750] sm:$0xff] }
  0x41   : > { %595 = vmatprep.subr.mxu1 %v347_v25  ;;  %525 = vmatpush2.msra.mxu0 %v250_v26  ;;  %v410_v8 = vld [vmem:[%s2211_s1 + $0x758] sm:$0xff]  ;;  %v219_v11 = vld [vmem:[%s2211_s1 + $0x160] sm:$0xff]  ;;  %v264_v13 = vld [vmem:[%s2211_s1 + $0x2c8] sm:$0xff] }
  0x42   : > { %596 = vmatpush2.msra.mxu1 %v346_v27  ;;  %526 = vmatprep.subr.mxu0 %v248_v28  ;;  %v407_v12 = vld [vmem:[%s2211_s1 + $0x740] sm:$0xff]  ;;  %v406_v14 = vld [vmem:[%s2211_s1 + $0x738] sm:$0xff]  ;;  %v216_v15 = vld [vmem:[%s2211_s1 + $0x148] sm:$0xff] }
  0x43   : > { %597 = vmatprep.subr.mxu1 %v344_v29  ;;  %527 = vmatpush2.msra.mxu0 %v247_v30  ;;  %v404_v16 = vld [vmem:[%s2211_s1 + $0x728] sm:$0xff]  ;;  %v261_v17 = vld [vmem:[%s2211_s1 + $0x2b0] sm:$0xff]  ;;  %v403_v18 = vld [vmem:[%s2211_s1 + $0x720] sm:$0xff] }
  0x44   : > { %598 = vmatpush2.msra.mxu1 %v343_v31  ;;  %528 = vmatprep.subr.mxu0 %v245_v32  ;;  %v213_v19 = vld [vmem:[%s2211_s1 + $0x130] sm:$0xff]  ;;  %v258_v21 = vld [vmem:[%s2211_s1 + $0x298] sm:$0xff]  ;;  %v400_v22 = vld [vmem:[%s2211_s1 + $0x708] sm:$0xff] }
  0x45   : > { %599 = vmatprep.subr.mxu1 %v341_v33  ;;  %529 = vmatpush2.msra.mxu0 %v244_v34  ;;  %v401_v20 = vld [vmem:[%s2211_s1 + $0x710] sm:$0xff]  ;;  %v210_v23 = vld [vmem:[%s2211_s1 + $0x118] sm:$0xff]  ;;  %v255_v25 = vld [vmem:[%s2211_s1 + $0x280] sm:$0xff] }
  0x46   : > { %600 = vmatpush2.msra.mxu1 %v340_v35  ;;  %530 = vmatprep.subr.mxu0 %v242_v36  ;;  %v398_v24 = vld [vmem:[%s2211_s1 + $0x6f8] sm:$0xff]  ;;  %v397_v26 = vld [vmem:[%s2211_s1 + $0x6f0] sm:$0xff]  ;;  %v207_v27 = vld [vmem:[%s2211_s1 + $0x100] sm:$0xff] }
  0x47   : > { %601 = vmatprep.subr.mxu1 %v338_v37  ;;  %531 = vmatpush2.msra.mxu0 %v241_v38  ;;  %v395_v28 = vld [vmem:[%s2211_s1 + $0x6e0] sm:$0xff]  ;;  %v252_v29 = vld [vmem:[%s2211_s1 + $0x268] sm:$0xff]  ;;  %v394_v30 = vld [vmem:[%s2211_s1 + $0x6d8] sm:$0xff] }
  0x48   : > { %602 = vmatpush2.msra.mxu1 %v337_v39  ;;  %532 = vmatprep.subr.mxu0 %v239_v40  ;;  %v204_v31 = vld [vmem:[%s2211_s1 + $0xe8] sm:$0xff]  ;;  %v249_v33 = vld [vmem:[%s2211_s1 + $0x250] sm:$0xff]  ;;  %v391_v34 = vld [vmem:[%s2211_s1 + $0x6c0] sm:$0xff] }
  0x49   : > { %603 = vmatprep.subr.mxu1 %v335_v41  ;;  %533 = vmatpush2.msra.mxu0 %v238_v42  ;;  %v392_v32 = vld [vmem:[%s2211_s1 + $0x6c8] sm:$0xff]  ;;  %v201_v35 = vld [vmem:[%s2211_s1 + $0xd0] sm:$0xff]  ;;  %v246_v37 = vld [vmem:[%s2211_s1 + $0x238] sm:$0xff] }
  0x4a   : > { %604 = vmatpush2.msra.mxu1 %v334_v43  ;;  %534 = vmatprep.subr.mxu0 %v236_v44  ;;  %v389_v36 = vld [vmem:[%s2211_s1 + $0x6b0] sm:$0xff]  ;;  %v388_v38 = vld [vmem:[%s2211_s1 + $0x6a8] sm:$0xff]  ;;  %v198_v39 = vld [vmem:[%s2211_s1 + $0xb8] sm:$0xff] }
  0x4b   : > { %605 = vmatprep.subr.mxu1 %v332_v45  ;;  %535 = vmatpush2.msra.mxu0 %v235_v46  ;;  %v386_v40 = vld [vmem:[%s2211_s1 + $0x698] sm:$0xff]  ;;  %v243_v41 = vld [vmem:[%s2211_s1 + $0x220] sm:$0xff]  ;;  %v385_v42 = vld [vmem:[%s2211_s1 + $0x690] sm:$0xff] }
  0x4c   : > { %606 = vmatpush2.msra.mxu1 %v331_v47  ;;  %536 = vmatprep.subr.mxu0 %v233_v48  ;;  %v195_v43 = vld [vmem:[%s2211_s1 + $0xa0] sm:$0xff]  ;;  %v240_v45 = vld [vmem:[%s2211_s1 + $0x208] sm:$0xff]  ;;  %v382_v46 = vld [vmem:[%s2211_s1 + $0x678] sm:$0xff] }
  0x4d   : > { %607 = vmatprep.subr.mxu1 %v329_v49  ;;  %537 = vmatpush2.msra.mxu0 %v232_v50  ;;  %v383_v44 = vld [vmem:[%s2211_s1 + $0x680] sm:$0xff]  ;;  %v192_v47 = vld [vmem:[%s2211_s1 + $0x88] sm:$0xff]  ;;  %v237_v49 = vld [vmem:[%s2211_s1 + $0x1f0] sm:$0xff] }
  0x4e   : > { %608 = vmatpush2.msra.mxu1 %v328_v51  ;;  %538 = vmatprep.subr.mxu0 %v230_v52  ;;  %v380_v48 = vld [vmem:[%s2211_s1 + $0x668] sm:$0xff]  ;;  %v379_v50 = vld [vmem:[%s2211_s1 + $0x660] sm:$0xff]  ;;  %v189_v51 = vld [vmem:[%s2211_s1 + $0x70] sm:$0xff] }
  0x4f   : > { %609 = vmatprep.subr.mxu1 %v326_v53  ;;  %539 = vmatpush2.msra.mxu0 %v229_v54  ;;  %v377_v52 = vld [vmem:[%s2211_s1 + $0x650] sm:$0xff]  ;;  %v234_v53 = vld [vmem:[%s2211_s1 + $0x1d8] sm:$0xff]  ;;  %v376_v54 = vld [vmem:[%s2211_s1 + $0x648] sm:$0xff] }
  0x50   : > { %610 = vmatpush2.msra.mxu1 %v325_v55  ;;  %540 = vmatprep.subr.mxu0 %v227_v56  ;;  %v186_v55 = vld [vmem:[%s2211_s1 + $0x58] sm:$0xff] }
  0x51   : > { %611 = vmatprep.subr.mxu1 %v323_v57  ;;  %541 = vmatpush2.msra.mxu0 %v226_v58  ;;  %v374_v56 = vld [vmem:[%s2211_s1 + $0x638] sm:$0xff]  ;;  %v231_v57 = vld [vmem:[%s2211_s1 + $0x1c0] sm:$0xff]  ;;  %v373_v58 = vld [vmem:[%s2211_s1 + $0x630] sm:$0xff] }
  0x52   : > { %612 = vmatpush2.msra.mxu1 %v322_v59  ;;  %542 = vmatprep.subr.mxu0 %v224_v60  ;;  %v183_v59 = vld [vmem:[%s2211_s1 + $0x40] sm:$0xff] }
  0x53   : > { %613 = vmatprep.subr.mxu1 %v320_v61  ;;  %543 = vmatpush2.msra.mxu0 %v223_v62  ;;  %v371_v60 = vld [vmem:[%s2211_s1 + $0x620] sm:$0xff]  ;;  %v228_v61 = vld [vmem:[%s2211_s1 + $0x1a8] sm:$0xff]  ;;  %v370_v62 = vld [vmem:[%s2211_s1 + $0x618] sm:$0xff] }
  0x54   : > { %544 = vmatprep.mubr.f32.mxu0 %v1661_v63  ;;  %614 = vmatpush2.msra.mxu1 %v319_v0  ;;  %v180_v0 = vld [vmem:[%s2211_s1 + $0x28] sm:$0xff] }
  0x55   : > { %545 = vmatmul.mubr.f32.vlgmr.msra.gmra.mxu0 %v1667_v1  ;;  %615 = vmatprep.mubr.f32.mxu1 %v1670_v2 }
  0x56   : > { %622 = vmatprep.subr.mxu0 %v413_v3  ;;  %989 = vmatprep.subr.mxu1 %v270_v4  ;;  %v368_v3 = vld [vmem:[%s2211_s1 + $0x608] sm:$0xff]  ;;  %v225_v4 = vld [vmem:[%s2211_s1 + $0x190] sm:$0xff] }
  0x57   : > { %616 = vmatmul.mubr.f32.vlgmr.msra.gmra.mxu1 %v1680_v5  ;;  %623 = vmatpush1.msra.mxu0 %v412_v6  ;;  %v367_v6 = vld [vmem:[%s2211_s1 + $0x600] sm:$0xff] }
  0x58   : > { %990 = vmatpush3.msra.mxu1 %v222_v7  ;;  %624 = vmatprep.subr.mxu0 %v410_v8  ;;  %v177_v7 = vld [vmem:[%s2211_s1 + $0x10] sm:$0xff] }
  0x59   : > { %991 = vmatprep.subr.mxu1 %v267_v9  ;;  %625 = vmatpush1.msra.mxu0 %v409_v10  ;;  %v461_v8 = vld [vmem:[%s2211_s1 + $0x8f0] sm:$0xff]  ;;  %v366_v9 = vld [vmem:[%s2211_s1 + $0x5f8] sm:$0xff]  ;;  %v460_v10 = vld [vmem:[%s2211_s1 + $0x8e8] sm:$0xff] }
  0x5a   : > { %992 = vmatpush3.msra.mxu1 %v219_v11  ;;  %626 = vmatprep.subr.mxu0 %v407_v12  ;;  %v458_v11 = vld [vmem:[%s2211_s1 + $0x8d8] sm:$0xff] }
  0x5b   : > { %993 = vmatprep.subr.mxu1 %v264_v13  ;;  %627 = vmatpush1.msra.mxu0 %v406_v14  ;;  %v318_v12 = vld [vmem:[%s2211_s1 + $0x478] sm:$0xff]  ;;  %v457_v13 = vld [vmem:[%s2211_s1 + $0x8d0] sm:$0xff]  ;;  %v363_v14 = vld [vmem:[%s2211_s1 + $0x5e0] sm:$0xff] }
  0x5c   : > { %994 = vmatpush3.msra.mxu1 %v216_v15  ;;  %628 = vmatprep.subr.mxu0 %v404_v16  ;;  %v455_v15 = vld [vmem:[%s2211_s1 + $0x8c0] sm:$0xff]  ;;  %v454_v16 = vld [vmem:[%s2211_s1 + $0x8b8] sm:$0xff] }
  0x5d   : > { %995 = vmatprep.subr.mxu1 %v261_v17  ;;  %629 = vmatpush1.msra.mxu0 %v403_v18  ;;  %v360_v17 = vld [vmem:[%s2211_s1 + $0x5c8] sm:$0xff] }
  0x5e   : > { %996 = vmatpush3.msra.mxu1 %v213_v19  ;;  %630 = vmatprep.subr.mxu0 %v401_v20  ;;  %v452_v18 = vld [vmem:[%s2211_s1 + $0x8a8] sm:$0xff]  ;;  %v451_v19 = vld [vmem:[%s2211_s1 + $0x8a0] sm:$0xff]  ;;  %v357_v20 = vld [vmem:[%s2211_s1 + $0x5b0] sm:$0xff] }
  0x5f   : > { %997 = vmatprep.subr.mxu1 %v258_v21  ;;  %631 = vmatpush1.msra.mxu0 %v400_v22  ;;  %v449_v21 = vld [vmem:[%s2211_s1 + $0x890] sm:$0xff] }
  0x60   : > { %998 = vmatpush3.msra.mxu1 %v210_v23  ;;  %632 = vmatprep.subr.mxu0 %v398_v24  ;;  %v309_v22 = vld [vmem:[%s2211_s1 + $0x430] sm:$0xff]  ;;  %v448_v23 = vld [vmem:[%s2211_s1 + $0x888] sm:$0xff]  ;;  %v354_v24 = vld [vmem:[%s2211_s1 + $0x598] sm:$0xff] }
  0x61   : > { %999 = vmatprep.subr.mxu1 %v255_v25  ;;  %633 = vmatpush1.msra.mxu0 %v397_v26  ;;  %v446_v25 = vld [vmem:[%s2211_s1 + $0x878] sm:$0xff] }
  0x62   : > { %1000 = vmatpush3.msra.mxu1 %v207_v27  ;;  %634 = vmatprep.subr.mxu0 %v395_v28  ;;  %v306_v26 = vld [vmem:[%s2211_s1 + $0x418] sm:$0xff]  ;;  %v445_v27 = vld [vmem:[%s2211_s1 + $0x870] sm:$0xff]  ;;  %v351_v28 = vld [vmem:[%s2211_s1 + $0x580] sm:$0xff] }
  0x63   : > { %1001 = vmatprep.subr.mxu1 %v252_v29  ;;  %635 = vmatpush1.msra.mxu0 %v394_v30  ;;  %v443_v29 = vld [vmem:[%s2211_s1 + $0x860] sm:$0xff] }
  0x64   : > { %1002 = vmatpush3.msra.mxu1 %v204_v31  ;;  %636 = vmatprep.subr.mxu0 %v392_v32  ;;  %v303_v30 = vld [vmem:[%s2211_s1 + $0x400] sm:$0xff]  ;;  %v442_v31 = vld [vmem:[%s2211_s1 + $0x858] sm:$0xff]  ;;  %v348_v32 = vld [vmem:[%s2211_s1 + $0x568] sm:$0xff] }
  0x65   : > { %1003 = vmatprep.subr.mxu1 %v249_v33  ;;  %637 = vmatpush1.msra.mxu0 %v391_v34  ;;  %v440_v33 = vld [vmem:[%s2211_s1 + $0x848] sm:$0xff] }
  0x66   : > { %1004 = vmatpush3.msra.mxu1 %v201_v35  ;;  %638 = vmatprep.subr.mxu0 %v389_v36  ;;  %v300_v34 = vld [vmem:[%s2211_s1 + $0x3e8] sm:$0xff]  ;;  %v439_v35 = vld [vmem:[%s2211_s1 + $0x840] sm:$0xff]  ;;  %v345_v36 = vld [vmem:[%s2211_s1 + $0x550] sm:$0xff] }
  0x67   : > { %1005 = vmatprep.subr.mxu1 %v246_v37  ;;  %639 = vmatpush1.msra.mxu0 %v388_v38  ;;  %v437_v37 = vld [vmem:[%s2211_s1 + $0x830] sm:$0xff] }
  0x68   : > { %1006 = vmatpush3.msra.mxu1 %v198_v39  ;;  %640 = vmatprep.subr.mxu0 %v386_v40  ;;  %v297_v38 = vld [vmem:[%s2211_s1 + $0x3d0] sm:$0xff]  ;;  %v436_v39 = vld [vmem:[%s2211_s1 + $0x828] sm:$0xff]  ;;  %v342_v40 = vld [vmem:[%s2211_s1 + $0x538] sm:$0xff] }
  0x69   : > { %1007 = vmatprep.subr.mxu1 %v243_v41  ;;  %641 = vmatpush1.msra.mxu0 %v385_v42  ;;  %v434_v41 = vld [vmem:[%s2211_s1 + $0x818] sm:$0xff] }
  0x6a   : > { %1008 = vmatpush3.msra.mxu1 %v195_v43  ;;  %642 = vmatprep.subr.mxu0 %v383_v44  ;;  %v294_v42 = vld [vmem:[%s2211_s1 + $0x3b8] sm:$0xff]  ;;  %v433_v43 = vld [vmem:[%s2211_s1 + $0x810] sm:$0xff]  ;;  %v339_v44 = vld [vmem:[%s2211_s1 + $0x520] sm:$0xff] }
  0x6b   : > { %1009 = vmatprep.subr.mxu1 %v240_v45  ;;  %643 = vmatpush1.msra.mxu0 %v382_v46  ;;  %v431_v45 = vld [vmem:[%s2211_s1 + $0x800] sm:$0xff] }
  0x6c   : > { %1010 = vmatpush3.msra.mxu1 %v192_v47  ;;  %644 = vmatprep.subr.mxu0 %v380_v48  ;;  %v291_v46 = vld [vmem:[%s2211_s1 + $0x3a0] sm:$0xff]  ;;  %v430_v47 = vld [vmem:[%s2211_s1 + $0x7f8] sm:$0xff]  ;;  %v336_v48 = vld [vmem:[%s2211_s1 + $0x508] sm:$0xff] }
  0x6d   : > { %1011 = vmatprep.subr.mxu1 %v237_v49  ;;  %645 = vmatpush1.msra.mxu0 %v379_v50  ;;  %v428_v49 = vld [vmem:[%s2211_s1 + $0x7e8] sm:$0xff] }
  0x6e   : > { %1012 = vmatpush3.msra.mxu1 %v189_v51  ;;  %646 = vmatprep.subr.mxu0 %v377_v52  ;;  %v288_v50 = vld [vmem:[%s2211_s1 + $0x388] sm:$0xff]  ;;  %v427_v51 = vld [vmem:[%s2211_s1 + $0x7e0] sm:$0xff]  ;;  %v333_v52 = vld [vmem:[%s2211_s1 + $0x4f0] sm:$0xff] }
  0x6f   : > { %1013 = vmatprep.subr.mxu1 %v234_v53  ;;  %647 = vmatpush1.msra.mxu0 %v376_v54  ;;  %v425_v53 = vld [vmem:[%s2211_s1 + $0x7d0] sm:$0xff] }
  0x70   : > { %1014 = vmatpush3.msra.mxu1 %v186_v55  ;;  %648 = vmatprep.subr.mxu0 %v374_v56  ;;  %v285_v54 = vld [vmem:[%s2211_s1 + $0x370] sm:$0xff]  ;;  %v424_v55 = vld [vmem:[%s2211_s1 + $0x7c8] sm:$0xff]  ;;  %v330_v56 = vld [vmem:[%s2211_s1 + $0x4d8] sm:$0xff] }
  0x71   : > { %1015 = vmatprep.subr.mxu1 %v231_v57  ;;  %649 = vmatpush1.msra.mxu0 %v373_v58  ;;  %v422_v57 = vld [vmem:[%s2211_s1 + $0x7b8] sm:$0xff] }
  0x72   : > { %1016 = vmatpush3.msra.mxu1 %v183_v59  ;;  %650 = vmatprep.subr.mxu0 %v371_v60  ;;  %v282_v58 = vld [vmem:[%s2211_s1 + $0x358] sm:$0xff]  ;;  %v421_v59 = vld [vmem:[%s2211_s1 + $0x7b0] sm:$0xff]  ;;  %v327_v60 = vld [vmem:[%s2211_s1 + $0x4c0] sm:$0xff] }
  0x73   : > { %1017 = vmatprep.subr.mxu1 %v228_v61  ;;  %651 = vmatpush1.msra.mxu0 %v370_v62  ;;  %v419_v61 = vld [vmem:[%s2211_s1 + $0x7a0] sm:$0xff] }
  0x74   : > { %1018 = vmatpush3.msra.mxu1 %v180_v0  ;;  %652 = vmatprep.subr.mxu0 %v368_v3  ;;  %v279_v62 = vld [vmem:[%s2211_s1 + $0x340] sm:$0xff]  ;;  %v418_v0 = vld [vmem:[%s2211_s1 + $0x798] sm:$0xff]  ;;  %v324_v3 = vld [vmem:[%s2211_s1 + $0x4a8] sm:$0xff] }
  0x75   : > { %1019 = vmatprep.subr.mxu1 %v225_v4  ;;  %653 = vmatpush1.msra.mxu0 %v367_v6  ;;  %v416_v4 = vld [vmem:[%s2211_s1 + $0x788] sm:$0xff] }
  0x76   : > { %1020 = vmatpush3.msra.mxu1 %v177_v7  ;;  %654 = vmatprep.subr.mxu0 %v461_v8  ;;  %v276_v6 = vld [vmem:[%s2211_s1 + $0x328] sm:$0xff]  ;;  %v415_v7 = vld [vmem:[%s2211_s1 + $0x780] sm:$0xff]  ;;  %v321_v8 = vld [vmem:[%s2211_s1 + $0x490] sm:$0xff] }
  0x77   : > { %757 = vmatprep.mubr.f32.mxu1 %v1661_v63  ;;  %1024 = vmatprep.subr.mxu1 %v366_v9  ;;  %v315_v63 = vld [vmem:[%s2211_s1 + $0x460] sm:$0xff]  ;;  %v174_v9 = vld [vmem:[%s1643_s19 + $0x28] sm:$0xff] }
  0x78   : > { %655 = vmatpush2.msra.mxu0 %v460_v10  ;;  %758 = vmatmul.mubr.f32.vlgmr.msra.gmra.mxu1 %v1667_v1  ;;  %v312_v1 = vld [vmem:[%s2211_s1 + $0x448] sm:$0xff]  ;;  %v273_v10 = vld [vmem:[%s2211_s1 + $0x310] sm:$0xff] }
  0x79   : > { %656 = vmatprep.subr.mxu0 %v458_v11  ;;  %1025 = vmatpush3.msra.mxu1 %v318_v12  ;;  %v2067_v11 = vld [vmem:[%s1643_s19 + $0x20] sm:$0xff]  ;;  %v462_v12 = vld [vmem:[%s2211_s1 + $0x8f8] sm:$0xff]  ;;  %s1142_s19 = scalar_lea.vmem %s1141_s20, 768 }
  0x7a   : > { %657 = vmatpush2.msra.mxu0 %v457_v13  ;;  %1026 = vmatprep.subr.mxu1 %v363_v14  ;;  %v414_v13 = vld [vmem:[%s2211_s1 + $0x778] sm:$0xff]  ;;  %v459_v14 = vld [vmem:[%s2211_s1 + $0x8e0] sm:$0xff]  ;;  %p1144_p1 = scmp.lt.s32.totalorder %s1142_s19, %s1136_s17 }
  0x7b   : > { %658 = vmatprep.subr.mxu0 %v455_v15  ;;  %1027 = vmatpush3.msra.mxu1 %v315_v63  ;;  %v411_v15 = vld [vmem:[%s2211_s1 + $0x760] sm:$0xff]  ;;  %v453_v63 = vld [vmem:[%s2211_s1 + $0x8b0] sm:$0xff] }
  0x7c   : > { %659 = vmatpush2.msra.mxu0 %v454_v16  ;;  %1028 = vmatprep.subr.mxu1 %v360_v17  ;;  %v405_v16 = vld [vmem:[%s2211_s1 + $0x730] sm:$0xff]  ;;  %v450_v17 = vld [vmem:[%s2211_s1 + $0x898] sm:$0xff]  ;;  %p1145_p2 = por %p1144_p1, %p1143_p0 }
  0x7d   : > { %660 = vmatprep.subr.mxu0 %v452_v18  ;;  %1029 = vmatpush3.msra.mxu1 %v312_v1  ;;  %v402_v18 = vld [vmem:[%s2211_s1 + $0x718] sm:$0xff]  ;;  %v447_v1 = vld [vmem:[%s2211_s1 + $0x880] sm:$0xff] }
  0x7e   : > { %661 = vmatpush2.msra.mxu0 %v451_v19  ;;  %1030 = vmatprep.subr.mxu1 %v357_v20  ;;  %v399_v19 = vld [vmem:[%s2211_s1 + $0x700] sm:$0xff]  ;;  %v444_v20 = vld [vmem:[%s2211_s1 + $0x868] sm:$0xff]  ;;  %p1146_p3 = pnand %p1145_p2, %p1139_p13 }
  0x7f   : > { %662 = vmatprep.subr.mxu0 %v449_v21  ;;  %1031 = vmatpush3.msra.mxu1 %v309_v22  ;;  %v396_v21 = vld [vmem:[%s2211_s1 + $0x6e8] sm:$0xff]  ;;  %v441_v22 = vld [vmem:[%s2211_s1 + $0x850] sm:$0xff] }
  0x80   : > { %663 = vmatpush2.msra.mxu0 %v448_v23  ;;  %1032 = vmatprep.subr.mxu1 %v354_v24  ;;  %v393_v23 = vld [vmem:[%s2211_s1 + $0x6d0] sm:$0xff]  ;;  %v438_v24 = vld [vmem:[%s2211_s1 + $0x838] sm:$0xff] }
  0x81   : > { %664 = vmatprep.subr.mxu0 %v446_v25  ;;  %1033 = vmatpush3.msra.mxu1 %v306_v26  ;;  %v390_v25 = vld [vmem:[%s2211_s1 + $0x6b8] sm:$0xff]  ;;  %v435_v26 = vld [vmem:[%s2211_s1 + $0x820] sm:$0xff] }
  0x82   : > { %665 = vmatpush2.msra.mxu0 %v445_v27  ;;  %1034 = vmatprep.subr.mxu1 %v351_v28  ;;  %v387_v27 = vld [vmem:[%s2211_s1 + $0x6a0] sm:$0xff]  ;;  %v432_v28 = vld [vmem:[%s2211_s1 + $0x808] sm:$0xff] }
  0x83   : > { %666 = vmatprep.subr.mxu0 %v443_v29  ;;  %1035 = vmatpush3.msra.mxu1 %v303_v30  ;;  %v384_v29 = vld [vmem:[%s2211_s1 + $0x688] sm:$0xff]  ;;  %v429_v30 = vld [vmem:[%s2211_s1 + $0x7f0] sm:$0xff] }
  0x84   : > { %667 = vmatpush2.msra.mxu0 %v442_v31  ;;  %1036 = vmatprep.subr.mxu1 %v348_v32  ;;  %v381_v31 = vld [vmem:[%s2211_s1 + $0x670] sm:$0xff]  ;;  %v426_v32 = vld [vmem:[%s2211_s1 + $0x7d8] sm:$0xff] }
  0x85   : > { %668 = vmatprep.subr.mxu0 %v440_v33  ;;  %1037 = vmatpush3.msra.mxu1 %v300_v34  ;;  %v378_v33 = vld [vmem:[%s2211_s1 + $0x658] sm:$0xff]  ;;  %v423_v34 = vld [vmem:[%s2211_s1 + $0x7c0] sm:$0xff] }
  0x86   : > { %669 = vmatpush2.msra.mxu0 %v439_v35  ;;  %1038 = vmatprep.subr.mxu1 %v345_v36  ;;  %v375_v35 = vld [vmem:[%s2211_s1 + $0x640] sm:$0xff]  ;;  %v420_v36 = vld [vmem:[%s2211_s1 + $0x7a8] sm:$0xff] }
  0x87   : > { %670 = vmatprep.subr.mxu0 %v437_v37  ;;  %1039 = vmatpush3.msra.mxu1 %v297_v38  ;;  %v372_v37 = vld [vmem:[%s2211_s1 + $0x628] sm:$0xff]  ;;  %v417_v38 = vld [vmem:[%s2211_s1 + $0x790] sm:$0xff] }
  0x88   : > { %671 = vmatpush2.msra.mxu0 %v436_v39  ;;  %1040 = vmatprep.subr.mxu1 %v342_v40  ;;  %v369_v39 = vld [vmem:[%s2211_s1 + $0x610] sm:$0xff]  ;;  %v465_v40 = vlaneseq }
  0x89   : > { %672 = vmatprep.subr.mxu0 %v434_v41  ;;  %1041 = vmatpush3.msra.mxu1 %v294_v42 }
  0x8a   : > { %673 = vmatpush2.msra.mxu0 %v433_v43  ;;  %1042 = vmatprep.subr.mxu1 %v339_v44  ;;  %v466_v41 = vshrl.u32 %v465_v40, 7  ;;  %v463_v43 = vld [vmem:[%s2212_s2] sm:$0x7] }
  0x8b   : > { %674 = vmatprep.subr.mxu0 %v431_v45  ;;  %1043 = vmatpush3.msra.mxu1 %v291_v46 }
  0x8c   : > { %675 = vmatpush2.msra.mxu0 %v430_v47  ;;  %1044 = vmatprep.subr.mxu1 %v336_v48  ;;  %v467_v42 = vsub.s32 0, %v466_v41  ;;  %v471_v44 = vsub.s32 1, %v466_v41 }
  0x8d   : > { %676 = vmatprep.subr.mxu0 %v428_v49  ;;  %1045 = vmatpush3.msra.mxu1 %v288_v50 }
  0x8e   : > { %677 = vmatpush2.msra.mxu0 %v427_v51  ;;  %1046 = vmatprep.subr.mxu1 %v333_v52  ;;  %v468_v46 = vrot.slane %v463_v43, %v467_v42  ;;  %v472_v47 = vrot.slane %v463_v43, %v471_v44 }
  0x8f   : > { %678 = vmatprep.subr.mxu0 %v425_v53  ;;  %1047 = vmatpush3.msra.mxu1 %v285_v54 }
  0x90   : > { %679 = vmatpush2.msra.mxu0 %v424_v55  ;;  %1048 = vmatprep.subr.mxu1 %v330_v56 }
  0x91   : > { %680 = vmatprep.subr.mxu0 %v422_v57  ;;  %1049 = vmatpush3.msra.mxu1 %v282_v58 }
  0x92   : > { %681 = vmatpush2.msra.mxu0 %v421_v59  ;;  %1050 = vmatprep.subr.mxu1 %v327_v60 }
  0x93   : > { %682 = vmatprep.subr.mxu0 %v419_v61  ;;  %1051 = vmatpush3.msra.mxu1 %v279_v62  ;;  %v475_v61 = vsub.s32 2, %v466_v41 }
  0x94   : > { %683 = vmatpush2.msra.mxu0 %v418_v0  ;;  %1052 = vmatprep.subr.mxu1 %v324_v3 }
  0x95   : > { %684 = vmatprep.subr.mxu0 %v416_v4  ;;  %1053 = vmatpush3.msra.mxu1 %v276_v6  ;;  %v476_v0 = vrot.slane %v463_v43, %v475_v61 }
  0x96   : > { %685 = vmatpush2.msra.mxu0 %v415_v7  ;;  %1054 = vmatprep.subr.mxu1 %v321_v8 }
  0x97   : > { %686 = vmatprep.mubr.f32.mxu0 %v174_v9  ;;  %1055 = vmatpush3.msra.mxu1 %v273_v10 }
  0x98   : > { %827 = vmatprep.mubr.f32.mxu1 %v1670_v2  ;;  %687 = vmatmul.mubr.f32.vlgmr.msra.gmra.mxu0 %v2067_v11  ;;  %v456_v2 = vld [vmem:[%s2211_s1 + $0x8c8] sm:$0xff] }
  0x99   : > { %828 = vmatmul.mubr.f32.vlgmr.msra.gmra.mxu1 %v1680_v5  ;;  %1059 = vmatprep.subr.mxu0 %v462_v12  ;;  %v408_v5 = vld [vmem:[%s2211_s1 + $0x748] sm:$0xff] }
  0x9a   : > { %897 = vmatprep.mubr.f32.mxu0 %v174_v9  ;;  %1060 = vmatpush3.msra.mxu0 %v414_v13 }
  0x9b   : > { %1061 = vmatprep.subr.mxu0 %v459_v14 }
  0x9c   : > { %1062 = vmatpush3.msra.mxu0 %v411_v15 }
  0x9d   : > { %1063 = vmatprep.subr.mxu0 %v456_v2 }
  0x9e   : > { %1064 = vmatpush3.msra.mxu0 %v408_v5 }
  0x9f   : > { %1065 = vmatprep.subr.mxu0 %v453_v63 }
  0xa0   : > { %1066 = vmatpush3.msra.mxu0 %v405_v16 }
  0xa1   : > { %1067 = vmatprep.subr.mxu0 %v450_v17 }
  0xa2   : > { %1068 = vmatpush3.msra.mxu0 %v402_v18 }
  0xa3   : > { %1069 = vmatprep.subr.mxu0 %v447_v1 }
  0xa4   : > { %1070 = vmatpush3.msra.mxu0 %v399_v19 }
  0xa5   : > { %1071 = vmatprep.subr.mxu0 %v444_v20 }
  0xa6   : > { %1072 = vmatpush3.msra.mxu0 %v396_v21 }
  0xa7   : > { %1073 = vmatprep.subr.mxu0 %v441_v22 }
  0xa8   : > { %1074 = vmatpush3.msra.mxu0 %v393_v23 }
  0xa9   : > { %1075 = vmatprep.subr.mxu0 %v438_v24 }
  0xaa   : > { %1076 = vmatpush3.msra.mxu0 %v390_v25 }
  0xab   : > { %1077 = vmatprep.subr.mxu0 %v435_v26 }
  0xac   : > { %1078 = vmatpush3.msra.mxu0 %v387_v27 }
  0xad   : > { %1079 = vmatprep.subr.mxu0 %v432_v28 }
  0xae   : > { %1080 = vmatpush3.msra.mxu0 %v384_v29 }
  0xaf   : > { %1081 = vmatprep.subr.mxu0 %v429_v30 }
  0xb0   : > { %1082 = vmatpush3.msra.mxu0 %v381_v31 }
  0xb1   : > { %1083 = vmatprep.subr.mxu0 %v426_v32 }
  0xb2   : > { %1084 = vmatpush3.msra.mxu0 %v378_v33 }
  0xb3   : > { %1085 = vmatprep.subr.mxu0 %v423_v34 }
  0xb4   : > { %1086 = vmatpush3.msra.mxu0 %v375_v35 }
  0xb5   : > { %1087 = vmatprep.subr.mxu0 %v420_v36 }
  0xb6   : > { %1088 = vmatpush3.msra.mxu0 %v372_v37 }
  0xb7   : > { %1089 = vmatprep.subr.mxu0 %v417_v38 }
  0xb8   : > { %1090 = vmatpush3.msra.mxu0 %v369_v39 }
  0xb9   : > { %898 = vmatmul.mubr.f32.vlgmr.msra.gmra.mxu0 %v2067_v11 }
 0x115   : > { %v546_v45 = vpop.f32.mrf.mxu0 }
 0x116   : > { %v547_v50 = vadd.f32 %v546_v45, %v468_v46 }
 0x117   : > { %v548_v48 = vpop.f32.mrf.mxu0  ;;  %v617_v49 = vpop.f32.mrf.mxu1 }
 0x118   : > { %v549_v51 = vadd.f32 %v548_v48, %v472_v47  ;;  %v618_v53 = vadd.f32 %v617_v49, %v547_v50 }
 0x119   : > { %v619_v52 = vpop.f32.mrf.mxu1 }
 0x11a   : > { %v620_v55 = vadd.f32 %v619_v52, %v549_v51 }
 0x138   : > { %v1021_v59 = vpop.f32.mrf.mxu1 }
 0x13a   : > { %v1022_v60 = vpop.f32.mrf.mxu1 }
 0x13b   : > { %v1023_v3 = vadd.f32 %v1022_v60, %v1021_v59 }
 0x13d   : > { %v760_v6 = vadd.f32 %v1023_v3, %v476_v0 }
 0x158   : > { %v688_v54 = vpop.f32.mrf.mxu0 }
 0x159   : > { %v689_v56 = vadd.f32 %v688_v54, %v618_v53  ;;  %v1056_v62 = vpop.f32.mrf.mxu1 }
 0x15a   : > { %v690_v57 = vpop.f32.mrf.mxu0 }
 0x15b   : > { %903 = vst [vmem:[%s163_s30] sm:$0xff] %v689_v56  ;;  %v691_v58 = vadd.f32 %v690_v57, %v620_v55  ;;  %v1057_v4 = vpop.f32.mrf.mxu1 }
 0x15c   : > { %v1058_v7 = vadd.f32 %v1057_v4, %v1056_v62 }
 0x15d   : > { %904 = vst [vmem:[%s163_s30 + $0x8] sm:$0xff] %v691_v58 }
 0x15e   : > { %v830_v10 = vadd.f32 %v1058_v7, %v760_v6 }
 0x179   : > { %v1091_v8 = vpop.f32.mrf.mxu0 }
 0x17b   : > { %v1092_v9 = vpop.f32.mrf.mxu0 }
 0x17c   : > { %v1093_v11 = vadd.f32 %v1092_v9, %v1091_v8 }
 0x17e   : > { %v900_v12 = vadd.f32 %v1093_v11, %v830_v10 }
 0x180   : > { %906 = vst.msk [vmem:[%s163_s30 + $0x10] sm:$0xff] %vm905_vm0, %v900_v12 }
 0x181   : > { %1149 = shalt.err (!%p1146_p3)
}
 0x182   : > { %s1150_s24 = scalar_lea.hbm %s920_s8, 384  ;;  %s1154_s27 = scalar_lea.hbm %s2213_s3, 768 }
 0x183   : > { %p1151_p4 = scmp.ne.s32.totalorder %s920_s8, %s1150_s24  ;;  %p1155_p9 = scmp.lt.s32.totalorder %s920_s8, %s2213_s3 }
 0x184   : > { %p1156_p10 = scmp.lt.s32.totalorder %s1154_s27, %s1150_s24 }
 0x185   : > { %p1152_p7 = pnand %p1151_p4, %p1257_p5 }
 0x186   : > { %p1157_p11 = por %p1156_p10, %p1155_p9 }
 0x187   : > { %p1153_p8 = pneg %p1152_p7 }
 0x189   : > { %p1158_p12 = pnand %p1157_p11, %p1153_p8 }
 0x18b   : > { %1161 = shalt.err (!%p1158_p12)
}
 0x18c   : > { %1097 = dma.vmem_to_hbm [thread:$0]  (%p1257_p5), %s923_s5, 384, %s920_s8, %s908_s9  }
 0x18d PF: > { %p1103_p13 = scmp.ge.s32.totalorder %s1196_s15, 2  ;;  %s934_s11 = sand.u32 1, %s1184_s12  }
 0x18e   : > { %s935_s29 = scalar_lea.sflag [#allocation3], %s934_s11 }
 0x18f   : > { %p1100_p0 = pnand %p1103_p13, %p1261_p6 }
 0x191   : > { %p1101_p1 = pneg %p1100_p0 }
 0x193   : > { %1179 = dma.done.wait (%p1101_p1), %s935_s29, 384  }
 0x194   : > { %1181 = vsyncadd (%p1101_p1), %s935_s29, 4294966912  ;;  %p13_p2 = scmp.ge.s32.totalorder %s1244_s18, 4   ;;  %s2216_s12 = smov %s1188_s13 }
 0x195   : > { %s2217_s13 = smov %s1192_s14  ;;  %s2218_s14 = smov %s1255_s21 }
 0x196   : > { %s2219_s15 = smov %s1244_s18  ;;  %15 = sbr.rel (!%p13_p2) target bundleno = 3 (0x3), region = 67 }
 0x19b   :  { %940 = vsyncpa [#allocation3], 1 }
 0x19c   :  { %942 = vsyncpa [#allocation3 + $0x1], 1 }

</bundles_post_ra>
